<compile_context>
chip_gen: v5e
topology: v5e:2x2
jax: 0.10.0
libtpu: 0.0.40
codegen_flags: <defaults>
</compile_context>

<pallas_src>
import functools

import jax
import jax.numpy as jnp
from jax.experimental import pallas as pl
from jax.experimental.pallas import tpu as pltpu


def _mask_criterion_kernel(n_ref, *refs, top_k, has_lmask):
    if has_lmask:
        out_ref, tgt_ref, lm_ref, res_ref = refs
    else:
        out_ref, tgt_ref, res_ref = refs
        lm_ref = None

    tn, L = out_ref.shape  # block shape: (tile_n, L)

    # Global row ids for this tile.  Rows >= num_valid (ragged last block / caller
    # padding) contain unspecified data: sanitize them to 0 so NaN/Inf can't leak,
    # and zero their contributions with the (tn, 1) row mask.
    row = (jax.lax.broadcasted_iota(jnp.int32, (tn, 1), 0)
           + pl.program_id(0) * tn)
    valid = row < n_ref[0]
    rv = valid.astype(jnp.float32)

    x = jnp.where(valid, out_ref[...].astype(jnp.float32), 0.0)   # logits
    y = jnp.where(valid, tgt_ref[...].astype(jnp.float32), 0.0)   # binary targets

    # ---- shared transcendental work: e = exp(-|x|) feeds sigmoid AND softplus ----
    e = jnp.exp(-jnp.abs(x))
    s = pl.reciprocal(1.0 + e, approx=False)   # exact; approx=True if tolerance allows
    pred = jnp.where(x >= 0.0, s, e * s)       # == sigmoid(x)
    # BCE with logits: max(x,0) - x*y + log(1 + exp(-|x|))
    bce = jnp.maximum(x, 0.0) - x * y + jnp.log1p(e)
    if lm_ref is not None:
        bce = bce * jnp.where(valid, lm_ref[...].astype(jnp.float32), 0.0)

    # ---- dice (per-row partials; /num_objs happens in the wrapper) ----
    numer = 2.0 * jnp.sum(pred * y, axis=-1, keepdims=True)   # XLU reduction
    denom = jnp.sum(pred + y, axis=-1, keepdims=True)         # XLU reduction (fused sum)
    dice_row = (1.0 - (numer + 1.0) / (denom + 1.0)) * rv

    # ---- iterative top-k along the lane axis ----
    # stat class per element: bit0 = out_mask > 0, bit1 = tgt_mask > 0
    g = (x > 0.0).astype(jnp.int32) + 2 * (y > 0.0).astype(jnp.int32)
    lane = jax.lax.broadcasted_iota(jnp.int32, (tn, L), 1)
    keyed = lane * 4 + g          # unique per lane -> min() fuses tie-break + stat gather
    big = jnp.int32(4 * L)
    zeros = jnp.zeros((tn, 1), jnp.float32)

    def step(_, carry):
        work, bce_sum, pred_pos, gt_pos, hard_neg = carry
        m = jnp.max(work, axis=-1, keepdims=True)            # XLU reduce #1: top value
        cand = jnp.where(work == m, keyed, big)
        sel = jnp.min(cand, axis=-1, keepdims=True)          # XLU reduce #2: lane*4 + class
        g_sel = sel & 3
        work = jnp.where(keyed == sel, -jnp.inf, work)       # knock out selected lane
        return (work,
                bce_sum + m,
                pred_pos + ((g_sel & 1) > 0).astype(jnp.float32),
                gt_pos + ((g_sel & 2) > 0).astype(jnp.float32),
                hard_neg + (g_sel > 0).astype(jnp.float32))

    # fori_loop bounds the live ranges of the (tn, L) loop-carried state (a Python
    # `for` does not); unroll keeps LLO scheduling visibility across steps.
    carry = (bce, zeros, zeros, zeros, zeros)
    carry = jax.lax.fori_loop(0, top_k, step, carry,
                              unroll=True if top_k <= 8 else 4)
    _, bce_sum, pred_pos, gt_pos, hard_neg = carry

    # ---- per-tile partial sums (invalid rows masked out) ----
    dice_p = jnp.sum(dice_row)
    bce_p = jnp.sum(bce_sum * rv)
    pred_p = jnp.sum(pred_pos * rv)
    gt_p = jnp.sum(gt_pos * rv)
    hard_p = jnp.sum(hard_neg * rv)

    # lane-dense (8, 128) output block: partial sums on sublane 0, lanes 0..4
    lane_r = jax.lax.broadcasted_iota(jnp.int32, (1, 128), 1)
    vals = jnp.where(lane_r == 0, dice_p,
           jnp.where(lane_r == 1, bce_p,
           jnp.where(lane_r == 2, pred_p,
           jnp.where(lane_r == 3, gt_p,
           jnp.where(lane_r == 4, hard_p, 0.0)))))
    sub = jax.lax.broadcasted_iota(jnp.int32, (8, 1), 0)
    res_ref[...] = jnp.where(sub == 0, vals, 0.0)


def _round_up(x, m):
    return ((x + m - 1) // m) * m


def _row_multiple(dtypes):
    """Sublane packing multiple: 8 for 32-bit, 16 for 16-bit, 32 for 8-bit inputs."""
    mult = 8
    for dt in dtypes:
        isz = jnp.dtype(dt).itemsize
        if 0 < isz < 4:
            mult = max(mult, 8 * (4 // isz))
    return mult


def _pick_tile_n(n, l, row_mult):
    """Row-tile size, vreg-budgeted.

    The top-k loop carries `work` (f32, tile_n x L) and `keyed` (i32, tile_n x L):
    keep 2*tile_n*L*4 bytes under ~32 vregs (128 KiB) so the carry stays in the
    64-vreg file instead of spilling to VMEM every step.  Additionally cap so that
    N >= 2*row_mult yields >= 2 grid tiles (both v7x TensorCores get work).
    """
    vreg_cap = max(row_mult, ((16384 // max(l, 1)) // row_mult) * row_mult)
    cap = vreg_cap
    if n >= 2 * row_mult:
        cap = min(cap, _round_up(-(-n // 2), row_mult))
    tile = min(cap, _round_up(n, row_mult))
    return max(row_mult, tile)


def mask_criterion(key, out_mask, tgt_mask, loss_weights, top_k, loss_mask=None,
                   num_valid=None):
    """Pallas-backed equivalent of MaskCriterion.forward (single-host).

    num_valid: optional true row count (int or traced scalar).  Pass it together
    with row-padded inputs to keep the call shape-stable across training steps;
    defaults to out_mask.shape[0].

    # TODO(synk): torch.distributed all_reduce of num_objs has no single-host
    # equivalent; num_objs is the local max(num_valid, 1) here.
    """
    N, L = out_mask.shape
    assert top_k <= L, "top_k must be <= number of mask points per row"
    has_lmask = loss_mask is not None

    if N == 0:
        # Degenerate: no matched queries.  Losses are 0 (sums over empty).
        # TODO(synk): torch returns NaN for .mean() over empty stats; we return 0.
        zero = jnp.float32(0.0)
        losses = {f"{key}_dice": (loss_weights["dice"], zero),
                  f"{key}_bce": (loss_weights["bce"], zero)}
        stats = {f"{key}_topk_pred_pos_ratio": zero,
                 f"{key}_topk_gt_pos_ratio": zero,
                 f"{key}_topk_hard_neg_ratio": zero}
        return losses, stats

    if num_valid is None:
        num_valid = N
    nv = jnp.asarray(num_valid, jnp.int32).reshape((1,))

    inputs = [out_mask, tgt_mask] + ([loss_mask] if has_lmask else [])
    n_inputs = len(inputs)
    dtypes = [a.dtype for a in inputs]

    row_mult = _row_multiple(dtypes)
    tile_n = _pick_tile_n(N, L, row_mult)
    num_tiles = pl.cdiv(N, tile_n)

    kernel = functools.partial(_mask_criterion_kernel, top_k=top_k,
                               has_lmask=has_lmask)

    # index_maps receive the scalar-prefetch ref as a trailing positional arg.
    in_specs = [pl.BlockSpec((tile_n, L), lambda i, n_ref: (i, 0))
                for _ in range(n_inputs)]
    out_spec = pl.BlockSpec((8, 128), lambda i, n_ref: (i, 0))

    bytes_in = sum(int(a.size) * jnp.dtype(a.dtype).itemsize for a in inputs)
    cost = pl.CostEstimate(
        flops=int(N) * int(L) * (16 + 8 * int(top_k)),
        transcendentals=3 * int(N) * int(L),
        bytes_accessed=bytes_in + int(num_tiles) * 8 * 128 * 4)

    res = pl.pallas_call(
        kernel,
        out_shape=jax.ShapeDtypeStruct((num_tiles * 8, 128), jnp.float32),
        grid_spec=pltpu.PrefetchScalarGridSpec(
            num_scalar_prefetch=1,
            grid=(num_tiles,),
            in_specs=in_specs,
            out_specs=out_spec),
        # If profiling shows a single v7x TensorCore doing all tiles, switch to
        # pltpu.CORE_PARALLEL here.
        compiler_params=pltpu.CompilerParams(
            dimension_semantics=("parallel",)),
        cost_estimate=cost,
    )(nv, *inputs)

    totals = jnp.sum(res, axis=0)                       # (128,) summed partials
    nv_f = jnp.maximum(nv[0], 1).astype(jnp.float32)
    num_objs = nv_f
    dice = totals[0] / num_objs
    bce = totals[1] / (num_objs * top_k)
    stat_den = jnp.maximum(nv[0] * top_k, 1).astype(jnp.float32)
    pred_r = totals[2] / stat_den
    gt_r = totals[3] / stat_den
    hard_r = totals[4] / stat_den

    losses = {
        f"{key}_dice": (loss_weights["dice"], dice),
        f"{key}_bce": (loss_weights["bce"], bce),
    }
    stats = {
        f"{key}_topk_pred_pos_ratio": pred_r,
        f"{key}_topk_gt_pos_ratio": gt_r,
        f"{key}_topk_hard_neg_ratio": hard_r,
    }
    return losses, stats


def _reference(out_mask, tgt_mask, top_k, loss_mask=None):
    """Pure-JAX reference mirroring the PyTorch forward."""
    N = out_mask.shape[0]
    num_objs = float(max(N, 1))
    pred = jax.nn.sigmoid(out_mask)
    numer = 2.0 * jnp.sum(pred * tgt_mask, -1)
    denom = jnp.sum(pred, -1) + jnp.sum(tgt_mask, -1)
    dice = jnp.sum(1.0 - (numer + 1.0) / (denom + 1.0)) / num_objs
    bce = (jnp.maximum(out_mask, 0.0) - out_mask * tgt_mask
           + jnp.log1p(jnp.exp(-jnp.abs(out_mask))))
    if loss_mask is not None:
        bce = bce * loss_mask
    bce_topk, topk_ids = jax.lax.top_k(bce, top_k)
    out_g = jnp.take_along_axis(out_mask, topk_ids, axis=1)
    tgt_g = jnp.take_along_axis(tgt_mask, topk_ids, axis=1)
    bce_l = jnp.sum(bce_topk) / (num_objs * top_k)
    return (dice, bce_l,
            jnp.mean((out_g > 0).astype(jnp.float32)),
            jnp.mean((tgt_g > 0).astype(jnp.float32)),
            jnp.mean(((out_g > 0) | (tgt_g > 0)).astype(jnp.float32)))


if __name__ == "__main__":
    import numpy as np

    loss_weights = {"bce": 1.0, "dice": 1.0}
    rng = jax.random.PRNGKey(0)
    k1, k2, k3, k4, k5, k6, k7 = jax.random.split(rng, 7)

    def run_and_check(out_mask, tgt_mask, top_k, loss_mask=None):
        losses, stats = mask_criterion("grasp", out_mask, tgt_mask, loss_weights,
                                       top_k, loss_mask=loss_mask)
        jax.block_until_ready([v for (_, v) in losses.values()]
                              + list(stats.values()))
        got = np.array([losses["grasp_dice"][1], losses["grasp_bce"][1],
                        stats["grasp_topk_pred_pos_ratio"],
                        stats["grasp_topk_gt_pos_ratio"],
                        stats["grasp_topk_hard_neg_ratio"]])
        ref = np.array(_reference(out_mask, tgt_mask, top_k, loss_mask=loss_mask))
        np.testing.assert_allclose(got, ref, rtol=1e-5, atol=1e-5)

    L, TOP_K = 128, 8

    # Case 1: N equal to the row tile, no loss_mask.
    out1 = jax.random.normal(k1, (8, L), jnp.float32) * 2.0          # logits
    tgt1 = (jax.random.uniform(k2, (8, L)) > 0.5).astype(jnp.float32)
    run_and_check(out1, tgt1, TOP_K)

    # Case 2: ragged N (single partial tile -> in-kernel sanitize + row mask) + loss_mask.
    out2 = jax.random.normal(k3, (13, L), jnp.float32) * 2.0
    tgt2 = (jax.random.uniform(k4, (13, L)) > 0.5).astype(jnp.float32)
    lm2 = (jax.random.uniform(k5, (13, L)) > 0.2).astype(jnp.float32)
    run_and_check(out2, tgt2, TOP_K, loss_mask=lm2)

    # Case 3: multi-tile grid (>= 2 tiles), ragged last tile, larger top_k (unroll=4 path).
    out3 = jax.random.normal(k6, (40, L), jnp.float32) * 2.0
    tgt3 = (jax.random.uniform(k7, (40, L)) > 0.5).astype(jnp.float32)
    run_and_check(out3, tgt3, 16)

    print("KERNEL_OK")
</pallas_src>

<mosaic_0001>
module attributes {stable_mosaic.version = 11 : i64} {
  func.func @_mask_criterion_kernel(%arg0: i32, %arg1: memref<1xi32, #tpu.memory_space<smem>>, %arg2: memref<8x128xf32, #tpu.memory_space<vmem>>, %arg3: memref<8x128xf32, #tpu.memory_space<vmem>>, %arg4: memref<8x128xf32, #tpu.memory_space<vmem>>) attributes {dimension_semantics = [#tpu.dimension_semantics<parallel>], iteration_bounds = array<i64: 1>, scalar_prefetch = 1 : i64, scratch_operands = 0 : i64, tpu.core_type = #tpu.core_type<tc>, window_params = [{transform_indices = @transform_0, window_bounds = array<i64: 8, 128>}, {transform_indices = @transform_1, window_bounds = array<i64: 8, 128>}, {transform_indices = @transform_2, window_bounds = array<i64: 8, 128>}]} {
    %0 = tpu.iota {dimensions = array<i32: 0>} : vector<8x1xi32>
    %c8_i32 = arith.constant 8 : i32
    %1 = arith.muli %arg0, %c8_i32 : i32
    %2 = vector.broadcast %1 : i32 to vector<8x1xi32>
    %3 = arith.addi %0, %2 : vector<8x1xi32>
    %c0 = arith.constant 0 : index
    %4 = memref.load %arg1[%c0] : memref<1xi32, #tpu.memory_space<smem>>
    %5 = vector.broadcast %4 : i32 to vector<8x1xi32>
    %6 = arith.cmpi slt, %3, %5 : vector<8x1xi32>
    %7 = arith.extui %6 : vector<8x1xi1> to vector<8x1xi32>
    %8 = arith.sitofp %7 : vector<8x1xi32> to vector<8x1xf32>
    %c0_0 = arith.constant 0 : index
    %c0_1 = arith.constant 0 : index
    %9 = vector.load %arg2[%c0_0, %c0_1] : memref<8x128xf32, #tpu.memory_space<vmem>>, vector<8x128xf32>
    %cst = arith.constant 0.000000e+00 : f32
    %10 = vector.shape_cast %6 : vector<8x1xi1> to vector<8x1xi1>
    %11 = vector.broadcast %10 : vector<8x1xi1> to vector<8x128xi1>
    %12 = vector.broadcast %cst : f32 to vector<8x128xf32>
    %13 = arith.select %11, %9, %12 : vector<8x128xi1>, vector<8x128xf32>
    %c0_2 = arith.constant 0 : index
    %c0_3 = arith.constant 0 : index
    %14 = vector.load %arg3[%c0_2, %c0_3] : memref<8x128xf32, #tpu.memory_space<vmem>>, vector<8x128xf32>
    %cst_4 = arith.constant 0.000000e+00 : f32
    %15 = vector.shape_cast %6 : vector<8x1xi1> to vector<8x1xi1>
    %16 = vector.broadcast %15 : vector<8x1xi1> to vector<8x128xi1>
    %17 = vector.broadcast %cst_4 : f32 to vector<8x128xf32>
    %18 = arith.select %16, %14, %17 : vector<8x128xi1>, vector<8x128xf32>
    %19 = math.absf %13 : vector<8x128xf32>
    %cst_5 = arith.constant 0.000000e+00 : f32
    %20 = vector.broadcast %cst_5 : f32 to vector<8x128xf32>
    %21 = arith.subf %20, %19 : vector<8x128xf32>
    %22 = math.exp %21 : vector<8x128xf32>
    %cst_6 = arith.constant 1.000000e+00 : f32
    %23 = vector.broadcast %cst_6 : f32 to vector<8x128xf32>
    %24 = arith.addf %23, %22 : vector<8x128xf32>
    %25 = tpu.reciprocal %24 : vector<8x128xf32> -> vector<8x128xf32>
    %cst_7 = arith.constant 0.000000e+00 : f32
    %26 = vector.broadcast %cst_7 : f32 to vector<8x128xf32>
    %27 = arith.cmpf oge, %13, %26 : vector<8x128xf32>
    %28 = arith.mulf %22, %25 : vector<8x128xf32>
    %29 = arith.select %27, %25, %28 : vector<8x128xi1>, vector<8x128xf32>
    %cst_8 = arith.constant 0.000000e+00 : f32
    %30 = vector.broadcast %cst_8 : f32 to vector<8x128xf32>
    %31 = arith.maximumf %13, %30 : vector<8x128xf32>
    %32 = arith.mulf %13, %18 : vector<8x128xf32>
    %33 = arith.subf %31, %32 : vector<8x128xf32>
    %34 = math.log1p %22 : vector<8x128xf32>
    %35 = arith.addf %33, %34 : vector<8x128xf32>
    %36 = arith.mulf %29, %18 : vector<8x128xf32>
    %cst_9 = arith.constant dense<0.000000e+00> : vector<8xf32>
    %37 = vector.multi_reduction <add>, %36, %cst_9 [1] : vector<8x128xf32> to vector<8xf32>
    %38 = vector.shape_cast %37 : vector<8xf32> to vector<8x1xf32>
    %cst_10 = arith.constant 2.000000e+00 : f32
    %39 = vector.broadcast %cst_10 : f32 to vector<8x1xf32>
    %40 = arith.mulf %39, %38 : vector<8x1xf32>
    %41 = arith.addf %29, %18 : vector<8x128xf32>
    %cst_11 = arith.constant dense<0.000000e+00> : vector<8xf32>
    %42 = vector.multi_reduction <add>, %41, %cst_11 [1] : vector<8x128xf32> to vector<8xf32>
    %43 = vector.shape_cast %42 : vector<8xf32> to vector<8x1xf32>
    %cst_12 = arith.constant 1.000000e+00 : f32
    %44 = vector.broadcast %cst_12 : f32 to vector<8x1xf32>
    %45 = arith.addf %40, %44 : vector<8x1xf32>
    %cst_13 = arith.constant 1.000000e+00 : f32
    %46 = vector.broadcast %cst_13 : f32 to vector<8x1xf32>
    %47 = arith.addf %43, %46 : vector<8x1xf32>
    %48 = arith.divf %45, %47 : vector<8x1xf32>
    %cst_14 = arith.constant 1.000000e+00 : f32
    %49 = vector.broadcast %cst_14 : f32 to vector<8x1xf32>
    %50 = arith.subf %49, %48 : vector<8x1xf32>
    %51 = arith.mulf %50, %8 : vector<8x1xf32>
    %cst_15 = arith.constant 0.000000e+00 : f32
    %52 = vector.broadcast %cst_15 : f32 to vector<8x128xf32>
    %53 = arith.cmpf ogt, %13, %52 : vector<8x128xf32>
    %54 = arith.extui %53 : vector<8x128xi1> to vector<8x128xi32>
    %cst_16 = arith.constant 0.000000e+00 : f32
    %55 = vector.broadcast %cst_16 : f32 to vector<8x128xf32>
    %56 = arith.cmpf ogt, %18, %55 : vector<8x128xf32>
    %57 = arith.extui %56 : vector<8x128xi1> to vector<8x128xi32>
    %c2_i32 = arith.constant 2 : i32
    %58 = vector.broadcast %c2_i32 : i32 to vector<8x128xi32>
    %59 = arith.muli %58, %57 : vector<8x128xi32>
    %60 = arith.addi %54, %59 : vector<8x128xi32>
    %61 = tpu.iota {dimensions = array<i32: 1>} : vector<8x128xi32>
    %c4_i32 = arith.constant 4 : i32
    %62 = vector.broadcast %c4_i32 : i32 to vector<8x128xi32>
    %63 = arith.muli %61, %62 : vector<8x128xi32>
    %64 = arith.addi %63, %60 : vector<8x128xi32>
    %cst_17 = arith.constant 0.000000e+00 : f32
    %65 = vector.broadcast %cst_17 : f32 to vector<8x1xf32>
    %c512_i32 = arith.constant 512 : i32
    %c0_i32 = arith.constant 0 : i32
    %cst_18 = arith.constant dense<0xFF800000> : vector<8xf32>
    %66 = vector.multi_reduction <maximumf>, %35, %cst_18 [1] : vector<8x128xf32> to vector<8xf32>
    %67 = vector.shape_cast %66 : vector<8xf32> to vector<8x1xf32>
    %68 = vector.broadcast %67 : vector<8x1xf32> to vector<8x128xf32>
    %69 = arith.cmpf oeq, %35, %68 : vector<8x128xf32>
    %70 = vector.broadcast %c512_i32 : i32 to vector<8x128xi32>
    %71 = arith.select %69, %64, %70 : vector<8x128xi1>, vector<8x128xi32>
    %cst_19 = arith.constant dense<2147483647> : vector<8xi32>
    %72 = vector.multi_reduction <minsi>, %71, %cst_19 [1] : vector<8x128xi32> to vector<8xi32>
    %73 = vector.shape_cast %72 : vector<8xi32> to vector<8x1xi32>
    %c3_i32 = arith.constant 3 : i32
    %74 = vector.broadcast %c3_i32 : i32 to vector<8x1xi32>
    %75 = arith.andi %73, %74 : vector<8x1xi32>
    %76 = vector.broadcast %73 : vector<8x1xi32> to vector<8x128xi32>
    %77 = arith.cmpi eq, %64, %76 : vector<8x128xi32>
    %cst_20 = arith.constant 0xFF800000 : f32
    %78 = vector.broadcast %cst_20 : f32 to vector<8x128xf32>
    %79 = arith.select %77, %78, %35 : vector<8x128xi1>, vector<8x128xf32>
    %80 = arith.addf %65, %67 : vector<8x1xf32>
    %c1_i32 = arith.constant 1 : i32
    %81 = vector.broadcast %c1_i32 : i32 to vector<8x1xi32>
    %82 = arith.andi %75, %81 : vector<8x1xi32>
    %c0_i32_21 = arith.constant 0 : i32
    %83 = vector.broadcast %c0_i32_21 : i32 to vector<8x1xi32>
    %84 = arith.cmpi sgt, %82, %83 : vector<8x1xi32>
    %85 = arith.extui %84 : vector<8x1xi1> to vector<8x1xi32>
    %86 = arith.sitofp %85 : vector<8x1xi32> to vector<8x1xf32>
    %87 = arith.addf %65, %86 : vector<8x1xf32>
    %c2_i32_22 = arith.constant 2 : i32
    %88 = vector.broadcast %c2_i32_22 : i32 to vector<8x1xi32>
    %89 = arith.andi %75, %88 : vector<8x1xi32>
    %c0_i32_23 = arith.constant 0 : i32
    %90 = vector.broadcast %c0_i32_23 : i32 to vector<8x1xi32>
    %91 = arith.cmpi sgt, %89, %90 : vector<8x1xi32>
    %92 = arith.extui %91 : vector<8x1xi1> to vector<8x1xi32>
    %93 = arith.sitofp %92 : vector<8x1xi32> to vector<8x1xf32>
    %94 = arith.addf %65, %93 : vector<8x1xf32>
    %c0_i32_24 = arith.constant 0 : i32
    %95 = vector.broadcast %c0_i32_24 : i32 to vector<8x1xi32>
    %96 = arith.cmpi sgt, %75, %95 : vector<8x1xi32>
    %97 = arith.extui %96 : vector<8x1xi1> to vector<8x1xi32>
    %98 = arith.sitofp %97 : vector<8x1xi32> to vector<8x1xf32>
    %99 = arith.addf %65, %98 : vector<8x1xf32>
    %c1_i32_25 = arith.constant 1 : i32
    %cst_26 = arith.constant dense<0xFF800000> : vector<8xf32>
    %100 = vector.multi_reduction <maximumf>, %79, %cst_26 [1] : vector<8x128xf32> to vector<8xf32>
    %101 = vector.shape_cast %100 : vector<8xf32> to vector<8x1xf32>
    %102 = vector.broadcast %101 : vector<8x1xf32> to vector<8x128xf32>
    %103 = arith.cmpf oeq, %79, %102 : vector<8x128xf32>
    %104 = vector.broadcast %c512_i32 : i32 to vector<8x128xi32>
    %105 = arith.select %103, %64, %104 : vector<8x128xi1>, vector<8x128xi32>
    %cst_27 = arith.constant dense<2147483647> : vector<8xi32>
    %106 = vector.multi_reduction <minsi>, %105, %cst_27 [1] : vector<8x128xi32> to vector<8xi32>
    %107 = vector.shape_cast %106 : vector<8xi32> to vector<8x1xi32>
    %c3_i32_28 = arith.constant 3 : i32
    %108 = vector.broadcast %c3_i32_28 : i32 to vector<8x1xi32>
    %109 = arith.andi %107, %108 : vector<8x1xi32>
    %110 = vector.broadcast %107 : vector<8x1xi32> to vector<8x128xi32>
    %111 = arith.cmpi eq, %64, %110 : vector<8x128xi32>
    %cst_29 = arith.constant 0xFF800000 : f32
    %112 = vector.broadcast %cst_29 : f32 to vector<8x128xf32>
    %113 = arith.select %111, %112, %79 : vector<8x128xi1>, vector<8x128xf32>
    %114 = arith.addf %80, %101 : vector<8x1xf32>
    %c1_i32_30 = arith.constant 1 : i32
    %115 = vector.broadcast %c1_i32_30 : i32 to vector<8x1xi32>
    %116 = arith.andi %109, %115 : vector<8x1xi32>
    %c0_i32_31 = arith.constant 0 : i32
    %117 = vector.broadcast %c0_i32_31 : i32 to vector<8x1xi32>
    %118 = arith.cmpi sgt, %116, %117 : vector<8x1xi32>
    %119 = arith.extui %118 : vector<8x1xi1> to vector<8x1xi32>
    %120 = arith.sitofp %119 : vector<8x1xi32> to vector<8x1xf32>
    %121 = arith.addf %87, %120 : vector<8x1xf32>
    %c2_i32_32 = arith.constant 2 : i32
    %122 = vector.broadcast %c2_i32_32 : i32 to vector<8x1xi32>
    %123 = arith.andi %109, %122 : vector<8x1xi32>
    %c0_i32_33 = arith.constant 0 : i32
    %124 = vector.broadcast %c0_i32_33 : i32 to vector<8x1xi32>
    %125 = arith.cmpi sgt, %123, %124 : vector<8x1xi32>
    %126 = arith.extui %125 : vector<8x1xi1> to vector<8x1xi32>
    %127 = arith.sitofp %126 : vector<8x1xi32> to vector<8x1xf32>
    %128 = arith.addf %94, %127 : vector<8x1xf32>
    %c0_i32_34 = arith.constant 0 : i32
    %129 = vector.broadcast %c0_i32_34 : i32 to vector<8x1xi32>
    %130 = arith.cmpi sgt, %109, %129 : vector<8x1xi32>
    %131 = arith.extui %130 : vector<8x1xi1> to vector<8x1xi32>
    %132 = arith.sitofp %131 : vector<8x1xi32> to vector<8x1xf32>
    %133 = arith.addf %99, %132 : vector<8x1xf32>
    %c2_i32_35 = arith.constant 2 : i32
    %cst_36 = arith.constant dense<0xFF800000> : vector<8xf32>
    %134 = vector.multi_reduction <maximumf>, %113, %cst_36 [1] : vector<8x128xf32> to vector<8xf32>
    %135 = vector.shape_cast %134 : vector<8xf32> to vector<8x1xf32>
    %136 = vector.broadcast %135 : vector<8x1xf32> to vector<8x128xf32>
    %137 = arith.cmpf oeq, %113, %136 : vector<8x128xf32>
    %138 = vector.broadcast %c512_i32 : i32 to vector<8x128xi32>
    %139 = arith.select %137, %64, %138 : vector<8x128xi1>, vector<8x128xi32>
    %cst_37 = arith.constant dense<2147483647> : vector<8xi32>
    %140 = vector.multi_reduction <minsi>, %139, %cst_37 [1] : vector<8x128xi32> to vector<8xi32>
    %141 = vector.shape_cast %140 : vector<8xi32> to vector<8x1xi32>
    %c3_i32_38 = arith.constant 3 : i32
    %142 = vector.broadcast %c3_i32_38 : i32 to vector<8x1xi32>
    %143 = arith.andi %141, %142 : vector<8x1xi32>
    %144 = vector.broadcast %141 : vector<8x1xi32> to vector<8x128xi32>
    %145 = arith.cmpi eq, %64, %144 : vector<8x128xi32>
    %cst_39 = arith.constant 0xFF800000 : f32
    %146 = vector.broadcast %cst_39 : f32 to vector<8x128xf32>
    %147 = arith.select %145, %146, %113 : vector<8x128xi1>, vector<8x128xf32>
    %148 = arith.addf %114, %135 : vector<8x1xf32>
    %c1_i32_40 = arith.constant 1 : i32
    %149 = vector.broadcast %c1_i32_40 : i32 to vector<8x1xi32>
    %150 = arith.andi %143, %149 : vector<8x1xi32>
    %c0_i32_41 = arith.constant 0 : i32
    %151 = vector.broadcast %c0_i32_41 : i32 to vector<8x1xi32>
    %152 = arith.cmpi sgt, %150, %151 : vector<8x1xi32>
    %153 = arith.extui %152 : vector<8x1xi1> to vector<8x1xi32>
    %154 = arith.sitofp %153 : vector<8x1xi32> to vector<8x1xf32>
    %155 = arith.addf %121, %154 : vector<8x1xf32>
    %c2_i32_42 = arith.constant 2 : i32
    %156 = vector.broadcast %c2_i32_42 : i32 to vector<8x1xi32>
    %157 = arith.andi %143, %156 : vector<8x1xi32>
    %c0_i32_43 = arith.constant 0 : i32
    %158 = vector.broadcast %c0_i32_43 : i32 to vector<8x1xi32>
    %159 = arith.cmpi sgt, %157, %158 : vector<8x1xi32>
    %160 = arith.extui %159 : vector<8x1xi1> to vector<8x1xi32>
    %161 = arith.sitofp %160 : vector<8x1xi32> to vector<8x1xf32>
    %162 = arith.addf %128, %161 : vector<8x1xf32>
    %c0_i32_44 = arith.constant 0 : i32
    %163 = vector.broadcast %c0_i32_44 : i32 to vector<8x1xi32>
    %164 = arith.cmpi sgt, %143, %163 : vector<8x1xi32>
    %165 = arith.extui %164 : vector<8x1xi1> to vector<8x1xi32>
    %166 = arith.sitofp %165 : vector<8x1xi32> to vector<8x1xf32>
    %167 = arith.addf %133, %166 : vector<8x1xf32>
    %c3_i32_45 = arith.constant 3 : i32
    %cst_46 = arith.constant dense<0xFF800000> : vector<8xf32>
    %168 = vector.multi_reduction <maximumf>, %147, %cst_46 [1] : vector<8x128xf32> to vector<8xf32>
    %169 = vector.shape_cast %168 : vector<8xf32> to vector<8x1xf32>
    %170 = vector.broadcast %169 : vector<8x1xf32> to vector<8x128xf32>
    %171 = arith.cmpf oeq, %147, %170 : vector<8x128xf32>
    %172 = vector.broadcast %c512_i32 : i32 to vector<8x128xi32>
    %173 = arith.select %171, %64, %172 : vector<8x128xi1>, vector<8x128xi32>
    %cst_47 = arith.constant dense<2147483647> : vector<8xi32>
    %174 = vector.multi_reduction <minsi>, %173, %cst_47 [1] : vector<8x128xi32> to vector<8xi32>
    %175 = vector.shape_cast %174 : vector<8xi32> to vector<8x1xi32>
    %c3_i32_48 = arith.constant 3 : i32
    %176 = vector.broadcast %c3_i32_48 : i32 to vector<8x1xi32>
    %177 = arith.andi %175, %176 : vector<8x1xi32>
    %178 = vector.broadcast %175 : vector<8x1xi32> to vector<8x128xi32>
    %179 = arith.cmpi eq, %64, %178 : vector<8x128xi32>
    %cst_49 = arith.constant 0xFF800000 : f32
    %180 = vector.broadcast %cst_49 : f32 to vector<8x128xf32>
    %181 = arith.select %179, %180, %147 : vector<8x128xi1>, vector<8x128xf32>
    %182 = arith.addf %148, %169 : vector<8x1xf32>
    %c1_i32_50 = arith.constant 1 : i32
    %183 = vector.broadcast %c1_i32_50 : i32 to vector<8x1xi32>
    %184 = arith.andi %177, %183 : vector<8x1xi32>
    %c0_i32_51 = arith.constant 0 : i32
    %185 = vector.broadcast %c0_i32_51 : i32 to vector<8x1xi32>
    %186 = arith.cmpi sgt, %184, %185 : vector<8x1xi32>
    %187 = arith.extui %186 : vector<8x1xi1> to vector<8x1xi32>
    %188 = arith.sitofp %187 : vector<8x1xi32> to vector<8x1xf32>
    %189 = arith.addf %155, %188 : vector<8x1xf32>
    %c2_i32_52 = arith.constant 2 : i32
    %190 = vector.broadcast %c2_i32_52 : i32 to vector<8x1xi32>
    %191 = arith.andi %177, %190 : vector<8x1xi32>
    %c0_i32_53 = arith.constant 0 : i32
    %192 = vector.broadcast %c0_i32_53 : i32 to vector<8x1xi32>
    %193 = arith.cmpi sgt, %191, %192 : vector<8x1xi32>
    %194 = arith.extui %193 : vector<8x1xi1> to vector<8x1xi32>
    %195 = arith.sitofp %194 : vector<8x1xi32> to vector<8x1xf32>
    %196 = arith.addf %162, %195 : vector<8x1xf32>
    %c0_i32_54 = arith.constant 0 : i32
    %197 = vector.broadcast %c0_i32_54 : i32 to vector<8x1xi32>
    %198 = arith.cmpi sgt, %177, %197 : vector<8x1xi32>
    %199 = arith.extui %198 : vector<8x1xi1> to vector<8x1xi32>
    %200 = arith.sitofp %199 : vector<8x1xi32> to vector<8x1xf32>
    %201 = arith.addf %167, %200 : vector<8x1xf32>
    %c4_i32_55 = arith.constant 4 : i32
    %cst_56 = arith.constant dense<0xFF800000> : vector<8xf32>
    %202 = vector.multi_reduction <maximumf>, %181, %cst_56 [1] : vector<8x128xf32> to vector<8xf32>
    %203 = vector.shape_cast %202 : vector<8xf32> to vector<8x1xf32>
    %204 = vector.broadcast %203 : vector<8x1xf32> to vector<8x128xf32>
    %205 = arith.cmpf oeq, %181, %204 : vector<8x128xf32>
    %206 = vector.broadcast %c512_i32 : i32 to vector<8x128xi32>
    %207 = arith.select %205, %64, %206 : vector<8x128xi1>, vector<8x128xi32>
    %cst_57 = arith.constant dense<2147483647> : vector<8xi32>
    %208 = vector.multi_reduction <minsi>, %207, %cst_57 [1] : vector<8x128xi32> to vector<8xi32>
    %209 = vector.shape_cast %208 : vector<8xi32> to vector<8x1xi32>
    %c3_i32_58 = arith.constant 3 : i32
    %210 = vector.broadcast %c3_i32_58 : i32 to vector<8x1xi32>
    %211 = arith.andi %209, %210 : vector<8x1xi32>
    %212 = vector.broadcast %209 : vector<8x1xi32> to vector<8x128xi32>
    %213 = arith.cmpi eq, %64, %212 : vector<8x128xi32>
    %cst_59 = arith.constant 0xFF800000 : f32
    %214 = vector.broadcast %cst_59 : f32 to vector<8x128xf32>
    %215 = arith.select %213, %214, %181 : vector<8x128xi1>, vector<8x128xf32>
    %216 = arith.addf %182, %203 : vector<8x1xf32>
    %c1_i32_60 = arith.constant 1 : i32
    %217 = vector.broadcast %c1_i32_60 : i32 to vector<8x1xi32>
    %218 = arith.andi %211, %217 : vector<8x1xi32>
    %c0_i32_61 = arith.constant 0 : i32
    %219 = vector.broadcast %c0_i32_61 : i32 to vector<8x1xi32>
    %220 = arith.cmpi sgt, %218, %219 : vector<8x1xi32>
    %221 = arith.extui %220 : vector<8x1xi1> to vector<8x1xi32>
    %222 = arith.sitofp %221 : vector<8x1xi32> to vector<8x1xf32>
    %223 = arith.addf %189, %222 : vector<8x1xf32>
    %c2_i32_62 = arith.constant 2 : i32
    %224 = vector.broadcast %c2_i32_62 : i32 to vector<8x1xi32>
    %225 = arith.andi %211, %224 : vector<8x1xi32>
    %c0_i32_63 = arith.constant 0 : i32
    %226 = vector.broadcast %c0_i32_63 : i32 to vector<8x1xi32>
    %227 = arith.cmpi sgt, %225, %226 : vector<8x1xi32>
    %228 = arith.extui %227 : vector<8x1xi1> to vector<8x1xi32>
    %229 = arith.sitofp %228 : vector<8x1xi32> to vector<8x1xf32>
    %230 = arith.addf %196, %229 : vector<8x1xf32>
    %c0_i32_64 = arith.constant 0 : i32
    %231 = vector.broadcast %c0_i32_64 : i32 to vector<8x1xi32>
    %232 = arith.cmpi sgt, %211, %231 : vector<8x1xi32>
    %233 = arith.extui %232 : vector<8x1xi1> to vector<8x1xi32>
    %234 = arith.sitofp %233 : vector<8x1xi32> to vector<8x1xf32>
    %235 = arith.addf %201, %234 : vector<8x1xf32>
    %c5_i32 = arith.constant 5 : i32
    %cst_65 = arith.constant dense<0xFF800000> : vector<8xf32>
    %236 = vector.multi_reduction <maximumf>, %215, %cst_65 [1] : vector<8x128xf32> to vector<8xf32>
    %237 = vector.shape_cast %236 : vector<8xf32> to vector<8x1xf32>
    %238 = vector.broadcast %237 : vector<8x1xf32> to vector<8x128xf32>
    %239 = arith.cmpf oeq, %215, %238 : vector<8x128xf32>
    %240 = vector.broadcast %c512_i32 : i32 to vector<8x128xi32>
    %241 = arith.select %239, %64, %240 : vector<8x128xi1>, vector<8x128xi32>
    %cst_66 = arith.constant dense<2147483647> : vector<8xi32>
    %242 = vector.multi_reduction <minsi>, %241, %cst_66 [1] : vector<8x128xi32> to vector<8xi32>
    %243 = vector.shape_cast %242 : vector<8xi32> to vector<8x1xi32>
    %c3_i32_67 = arith.constant 3 : i32
    %244 = vector.broadcast %c3_i32_67 : i32 to vector<8x1xi32>
    %245 = arith.andi %243, %244 : vector<8x1xi32>
    %246 = vector.broadcast %243 : vector<8x1xi32> to vector<8x128xi32>
    %247 = arith.cmpi eq, %64, %246 : vector<8x128xi32>
    %cst_68 = arith.constant 0xFF800000 : f32
    %248 = vector.broadcast %cst_68 : f32 to vector<8x128xf32>
    %249 = arith.select %247, %248, %215 : vector<8x128xi1>, vector<8x128xf32>
    %250 = arith.addf %216, %237 : vector<8x1xf32>
    %c1_i32_69 = arith.constant 1 : i32
    %251 = vector.broadcast %c1_i32_69 : i32 to vector<8x1xi32>
    %252 = arith.andi %245, %251 : vector<8x1xi32>
    %c0_i32_70 = arith.constant 0 : i32
    %253 = vector.broadcast %c0_i32_70 : i32 to vector<8x1xi32>
    %254 = arith.cmpi sgt, %252, %253 : vector<8x1xi32>
    %255 = arith.extui %254 : vector<8x1xi1> to vector<8x1xi32>
    %256 = arith.sitofp %255 : vector<8x1xi32> to vector<8x1xf32>
    %257 = arith.addf %223, %256 : vector<8x1xf32>
    %c2_i32_71 = arith.constant 2 : i32
    %258 = vector.broadcast %c2_i32_71 : i32 to vector<8x1xi32>
    %259 = arith.andi %245, %258 : vector<8x1xi32>
    %c0_i32_72 = arith.constant 0 : i32
    %260 = vector.broadcast %c0_i32_72 : i32 to vector<8x1xi32>
    %261 = arith.cmpi sgt, %259, %260 : vector<8x1xi32>
    %262 = arith.extui %261 : vector<8x1xi1> to vector<8x1xi32>
    %263 = arith.sitofp %262 : vector<8x1xi32> to vector<8x1xf32>
    %264 = arith.addf %230, %263 : vector<8x1xf32>
    %c0_i32_73 = arith.constant 0 : i32
    %265 = vector.broadcast %c0_i32_73 : i32 to vector<8x1xi32>
    %266 = arith.cmpi sgt, %245, %265 : vector<8x1xi32>
    %267 = arith.extui %266 : vector<8x1xi1> to vector<8x1xi32>
    %268 = arith.sitofp %267 : vector<8x1xi32> to vector<8x1xf32>
    %269 = arith.addf %235, %268 : vector<8x1xf32>
    %c6_i32 = arith.constant 6 : i32
    %cst_74 = arith.constant dense<0xFF800000> : vector<8xf32>
    %270 = vector.multi_reduction <maximumf>, %249, %cst_74 [1] : vector<8x128xf32> to vector<8xf32>
    %271 = vector.shape_cast %270 : vector<8xf32> to vector<8x1xf32>
    %272 = vector.broadcast %271 : vector<8x1xf32> to vector<8x128xf32>
    %273 = arith.cmpf oeq, %249, %272 : vector<8x128xf32>
    %274 = vector.broadcast %c512_i32 : i32 to vector<8x128xi32>
    %275 = arith.select %273, %64, %274 : vector<8x128xi1>, vector<8x128xi32>
    %cst_75 = arith.constant dense<2147483647> : vector<8xi32>
    %276 = vector.multi_reduction <minsi>, %275, %cst_75 [1] : vector<8x128xi32> to vector<8xi32>
    %277 = vector.shape_cast %276 : vector<8xi32> to vector<8x1xi32>
    %c3_i32_76 = arith.constant 3 : i32
    %278 = vector.broadcast %c3_i32_76 : i32 to vector<8x1xi32>
    %279 = arith.andi %277, %278 : vector<8x1xi32>
    %280 = vector.broadcast %277 : vector<8x1xi32> to vector<8x128xi32>
    %281 = arith.cmpi eq, %64, %280 : vector<8x128xi32>
    %cst_77 = arith.constant 0xFF800000 : f32
    %282 = vector.broadcast %cst_77 : f32 to vector<8x128xf32>
    %283 = arith.select %281, %282, %249 : vector<8x128xi1>, vector<8x128xf32>
    %284 = arith.addf %250, %271 : vector<8x1xf32>
    %c1_i32_78 = arith.constant 1 : i32
    %285 = vector.broadcast %c1_i32_78 : i32 to vector<8x1xi32>
    %286 = arith.andi %279, %285 : vector<8x1xi32>
    %c0_i32_79 = arith.constant 0 : i32
    %287 = vector.broadcast %c0_i32_79 : i32 to vector<8x1xi32>
    %288 = arith.cmpi sgt, %286, %287 : vector<8x1xi32>
    %289 = arith.extui %288 : vector<8x1xi1> to vector<8x1xi32>
    %290 = arith.sitofp %289 : vector<8x1xi32> to vector<8x1xf32>
    %291 = arith.addf %257, %290 : vector<8x1xf32>
    %c2_i32_80 = arith.constant 2 : i32
    %292 = vector.broadcast %c2_i32_80 : i32 to vector<8x1xi32>
    %293 = arith.andi %279, %292 : vector<8x1xi32>
    %c0_i32_81 = arith.constant 0 : i32
    %294 = vector.broadcast %c0_i32_81 : i32 to vector<8x1xi32>
    %295 = arith.cmpi sgt, %293, %294 : vector<8x1xi32>
    %296 = arith.extui %295 : vector<8x1xi1> to vector<8x1xi32>
    %297 = arith.sitofp %296 : vector<8x1xi32> to vector<8x1xf32>
    %298 = arith.addf %264, %297 : vector<8x1xf32>
    %c0_i32_82 = arith.constant 0 : i32
    %299 = vector.broadcast %c0_i32_82 : i32 to vector<8x1xi32>
    %300 = arith.cmpi sgt, %279, %299 : vector<8x1xi32>
    %301 = arith.extui %300 : vector<8x1xi1> to vector<8x1xi32>
    %302 = arith.sitofp %301 : vector<8x1xi32> to vector<8x1xf32>
    %303 = arith.addf %269, %302 : vector<8x1xf32>
    %c7_i32 = arith.constant 7 : i32
    %cst_83 = arith.constant dense<0xFF800000> : vector<8xf32>
    %304 = vector.multi_reduction <maximumf>, %283, %cst_83 [1] : vector<8x128xf32> to vector<8xf32>
    %305 = vector.shape_cast %304 : vector<8xf32> to vector<8x1xf32>
    %306 = vector.broadcast %305 : vector<8x1xf32> to vector<8x128xf32>
    %307 = arith.cmpf oeq, %283, %306 : vector<8x128xf32>
    %308 = vector.broadcast %c512_i32 : i32 to vector<8x128xi32>
    %309 = arith.select %307, %64, %308 : vector<8x128xi1>, vector<8x128xi32>
    %cst_84 = arith.constant dense<2147483647> : vector<8xi32>
    %310 = vector.multi_reduction <minsi>, %309, %cst_84 [1] : vector<8x128xi32> to vector<8xi32>
    %311 = vector.shape_cast %310 : vector<8xi32> to vector<8x1xi32>
    %c3_i32_85 = arith.constant 3 : i32
    %312 = vector.broadcast %c3_i32_85 : i32 to vector<8x1xi32>
    %313 = arith.andi %311, %312 : vector<8x1xi32>
    %314 = vector.broadcast %311 : vector<8x1xi32> to vector<8x128xi32>
    %315 = arith.cmpi eq, %64, %314 : vector<8x128xi32>
    %cst_86 = arith.constant 0xFF800000 : f32
    %316 = vector.broadcast %cst_86 : f32 to vector<8x128xf32>
    %317 = arith.select %315, %316, %283 : vector<8x128xi1>, vector<8x128xf32>
    %318 = arith.addf %284, %305 : vector<8x1xf32>
    %c1_i32_87 = arith.constant 1 : i32
    %319 = vector.broadcast %c1_i32_87 : i32 to vector<8x1xi32>
    %320 = arith.andi %313, %319 : vector<8x1xi32>
    %c0_i32_88 = arith.constant 0 : i32
    %321 = vector.broadcast %c0_i32_88 : i32 to vector<8x1xi32>
    %322 = arith.cmpi sgt, %320, %321 : vector<8x1xi32>
    %323 = arith.extui %322 : vector<8x1xi1> to vector<8x1xi32>
    %324 = arith.sitofp %323 : vector<8x1xi32> to vector<8x1xf32>
    %325 = arith.addf %291, %324 : vector<8x1xf32>
    %c2_i32_89 = arith.constant 2 : i32
    %326 = vector.broadcast %c2_i32_89 : i32 to vector<8x1xi32>
    %327 = arith.andi %313, %326 : vector<8x1xi32>
    %c0_i32_90 = arith.constant 0 : i32
    %328 = vector.broadcast %c0_i32_90 : i32 to vector<8x1xi32>
    %329 = arith.cmpi sgt, %327, %328 : vector<8x1xi32>
    %330 = arith.extui %329 : vector<8x1xi1> to vector<8x1xi32>
    %331 = arith.sitofp %330 : vector<8x1xi32> to vector<8x1xf32>
    %332 = arith.addf %298, %331 : vector<8x1xf32>
    %c0_i32_91 = arith.constant 0 : i32
    %333 = vector.broadcast %c0_i32_91 : i32 to vector<8x1xi32>
    %334 = arith.cmpi sgt, %313, %333 : vector<8x1xi32>
    %335 = arith.extui %334 : vector<8x1xi1> to vector<8x1xi32>
    %336 = arith.sitofp %335 : vector<8x1xi32> to vector<8x1xf32>
    %337 = arith.addf %303, %336 : vector<8x1xf32>
    %338 = vector.shape_cast %51 : vector<8x1xf32> to vector<1x8x1xf32>
    %cst_92 = arith.constant dense<0.000000e+00> : vector<1xf32>
    %339 = vector.multi_reduction <add>, %338, %cst_92 [1, 2] : vector<1x8x1xf32> to vector<1xf32>
    %340 = vector.shape_cast %339 : vector<1xf32> to vector<1x1x1xf32>
    %341 = vector.extract %340[0, 0, 0] : f32 from vector<1x1x1xf32>
    %342 = arith.mulf %318, %8 : vector<8x1xf32>
    %343 = vector.shape_cast %342 : vector<8x1xf32> to vector<1x8x1xf32>
    %cst_93 = arith.constant dense<0.000000e+00> : vector<1xf32>
    %344 = vector.multi_reduction <add>, %343, %cst_93 [1, 2] : vector<1x8x1xf32> to vector<1xf32>
    %345 = vector.shape_cast %344 : vector<1xf32> to vector<1x1x1xf32>
    %346 = vector.extract %345[0, 0, 0] : f32 from vector<1x1x1xf32>
    %347 = arith.mulf %325, %8 : vector<8x1xf32>
    %348 = vector.shape_cast %347 : vector<8x1xf32> to vector<1x8x1xf32>
    %cst_94 = arith.constant dense<0.000000e+00> : vector<1xf32>
    %349 = vector.multi_reduction <add>, %348, %cst_94 [1, 2] : vector<1x8x1xf32> to vector<1xf32>
    %350 = vector.shape_cast %349 : vector<1xf32> to vector<1x1x1xf32>
    %351 = vector.extract %350[0, 0, 0] : f32 from vector<1x1x1xf32>
    %352 = arith.mulf %332, %8 : vector<8x1xf32>
    %353 = vector.shape_cast %352 : vector<8x1xf32> to vector<1x8x1xf32>
    %cst_95 = arith.constant dense<0.000000e+00> : vector<1xf32>
    %354 = vector.multi_reduction <add>, %353, %cst_95 [1, 2] : vector<1x8x1xf32> to vector<1xf32>
    %355 = vector.shape_cast %354 : vector<1xf32> to vector<1x1x1xf32>
    %356 = vector.extract %355[0, 0, 0] : f32 from vector<1x1x1xf32>
    %357 = arith.mulf %337, %8 : vector<8x1xf32>
    %358 = vector.shape_cast %357 : vector<8x1xf32> to vector<1x8x1xf32>
    %cst_96 = arith.constant dense<0.000000e+00> : vector<1xf32>
    %359 = vector.multi_reduction <add>, %358, %cst_96 [1, 2] : vector<1x8x1xf32> to vector<1xf32>
    %360 = vector.shape_cast %359 : vector<1xf32> to vector<1x1x1xf32>
    %361 = vector.extract %360[0, 0, 0] : f32 from vector<1x1x1xf32>
    %362 = tpu.iota {dimensions = array<i32: 1>} : vector<1x128xi32>
    %c0_i32_97 = arith.constant 0 : i32
    %363 = vector.broadcast %c0_i32_97 : i32 to vector<1x128xi32>
    %364 = arith.cmpi eq, %362, %363 : vector<1x128xi32>
    %c1_i32_98 = arith.constant 1 : i32
    %365 = vector.broadcast %c1_i32_98 : i32 to vector<1x128xi32>
    %366 = arith.cmpi eq, %362, %365 : vector<1x128xi32>
    %c2_i32_99 = arith.constant 2 : i32
    %367 = vector.broadcast %c2_i32_99 : i32 to vector<1x128xi32>
    %368 = arith.cmpi eq, %362, %367 : vector<1x128xi32>
    %c3_i32_100 = arith.constant 3 : i32
    %369 = vector.broadcast %c3_i32_100 : i32 to vector<1x128xi32>
    %370 = arith.cmpi eq, %362, %369 : vector<1x128xi32>
    %c4_i32_101 = arith.constant 4 : i32
    %371 = vector.broadcast %c4_i32_101 : i32 to vector<1x128xi32>
    %372 = arith.cmpi eq, %362, %371 : vector<1x128xi32>
    %cst_102 = arith.constant 0.000000e+00 : f32
    %373 = vector.broadcast %361 : f32 to vector<1x128xf32>
    %374 = vector.broadcast %cst_102 : f32 to vector<1x128xf32>
    %375 = arith.select %372, %373, %374 : vector<1x128xi1>, vector<1x128xf32>
    %376 = vector.broadcast %356 : f32 to vector<1x128xf32>
    %377 = arith.select %370, %376, %375 : vector<1x128xi1>, vector<1x128xf32>
    %378 = vector.broadcast %351 : f32 to vector<1x128xf32>
    %379 = arith.select %368, %378, %377 : vector<1x128xi1>, vector<1x128xf32>
    %380 = vector.broadcast %346 : f32 to vector<1x128xf32>
    %381 = arith.select %366, %380, %379 : vector<1x128xi1>, vector<1x128xf32>
    %382 = vector.broadcast %341 : f32 to vector<1x128xf32>
    %383 = arith.select %364, %382, %381 : vector<1x128xi1>, vector<1x128xf32>
    %384 = tpu.iota {dimensions = array<i32: 0>} : vector<8x1xi32>
    %c0_i32_103 = arith.constant 0 : i32
    %385 = vector.broadcast %c0_i32_103 : i32 to vector<8x1xi32>
    %386 = arith.cmpi eq, %384, %385 : vector<8x1xi32>
    %cst_104 = arith.constant 0.000000e+00 : f32
    %387 = vector.shape_cast %386 : vector<8x1xi1> to vector<8x1xi1>
    %388 = vector.broadcast %387 : vector<8x1xi1> to vector<8x128xi1>
    %389 = vector.shape_cast %383 : vector<1x128xf32> to vector<1x128xf32>
    %390 = vector.broadcast %389 : vector<1x128xf32> to vector<8x128xf32>
    %391 = vector.broadcast %cst_104 : f32 to vector<8x128xf32>
    %392 = arith.select %388, %390, %391 : vector<8x128xi1>, vector<8x128xf32>
    %c0_105 = arith.constant 0 : index
    %c0_106 = arith.constant 0 : index
    %393 = vector.load %arg4[%c0_105, %c0_106] : memref<8x128xf32, #tpu.memory_space<vmem>>, vector<8x128xf32>
    tpu.vector_store %arg4[%c0_105, %c0_106], %392 {strides = array<i32>} : memref<8x128xf32, #tpu.memory_space<vmem>>, vector<8x128xf32>,
    return
  }
  func.func @transform_0(%arg0: i32, %arg1: memref<1xi32, #tpu.memory_space<smem>>) -> (i32, i32) {
    %c0_i32 = arith.constant 0 : i32
    %c0_i32_0 = arith.constant 0 : i32
    return %arg0, %c0_i32 : i32, i32
  }
  func.func @transform_1(%arg0: i32, %arg1: memref<1xi32, #tpu.memory_space<smem>>) -> (i32, i32) {
    %c0_i32 = arith.constant 0 : i32
    %c0_i32_0 = arith.constant 0 : i32
    return %arg0, %c0_i32 : i32, i32
  }
  func.func @transform_2(%arg0: i32, %arg1: memref<1xi32, #tpu.memory_space<smem>>) -> (i32, i32) {
    %c0_i32 = arith.constant 0 : i32
    %c0_i32_0 = arith.constant 0 : i32
    return %arg0, %c0_i32 : i32, i32
  }
}

</mosaic_0001>

<bundles_post_ra>
// kernel: tpu_custom_call.1
= control target key start
LH: loop header
LB: loop body
LE: loop exit
PB: predicated region body
PF: predicated region fallthrough
CT: control target
= control target key end

     0   :  { %9 = vsyncpa [#allocation5], 0  ;;  %s804_s0 = inlined_call_operand.<no memory space> [shape: s32[1], index: 0, kind: input, shape index: {}]   ;;  %s805_s1 = inlined_call_operand.hbm [shape: f32[8,128], index: 1, kind: input, shape index: {}]   ;;  %s806_s2 = inlined_call_operand.hbm [shape: f32[8,128], index: 2, kind: input, shape index: {}]   ;;  %s807_s3 = inlined_call_operand.hbm [shape: f32[8,128], index: 3, kind: output, shape index: {}]  }
   0x1   :  { %10 = vsyncpa [#allocation8], 0 }
   0x2   :  { %11 = vsyncpa [#allocation6], 0  ;;  %s17_s14 = sshll.u32 %s805_s1, 4  ;;  %s633_s15 = smov [#allocation4]   ;;  %s18_s14 = int_to_ptr.hbm [resolvable:$true] %s17_s14 }
   0x3   :  { %s19_s16 = sshll.u32 %s633_s15, 4  ;;  %s28_s19 = sshll.u32 %s806_s2, 4  ;;  %s20_s16 = int_to_ptr.vmem [resolvable:$true] %s19_s16  ;;  %s29_s19 = int_to_ptr.hbm [resolvable:$true] %s28_s19 }
   0x4   :  { %22 = dma.hbm_to_vmem [thread:$0]  %s18_s14, 128, %s20_s16, [#allocation5]  }
   0x5   :  { %s634_s20 = smov [#allocation7]  }
   0x6   :  { %s30_s21 = sshll.u32 %s634_s20, 4  ;;  %s31_s21 = int_to_ptr.vmem [resolvable:$true] %s30_s21 }
   0x7   :  { %33 = dma.hbm_to_vmem [thread:$0]  %s29_s19, 128, %s31_s21, [#allocation8]  }
   0x8   :  { %627 = dma.done.wait [#allocation5], 128  }
   0x9   :  { %628 = vsyncadd [#allocation5], 4294967168 }
   0xa   :  { %629 = dma.done.wait [#allocation8], 128  }
   0xb   :  { %630 = vsyncadd [#allocation8], 4294967168  ;;  %v42_v0 = vlaneseq  ;;  %v48_v2 = vstv %s804_s0  ;;  %v52_v4 = vld [vmem:[#allocation4] sm:$0xff]  ;;  %v55_v9 = vld [vmem:[#allocation7] sm:$0xff]  ;;  %v635_v24 = vmov 0   ;;  %s637_s26 = smov [#allocation9]  }
   0xc   :  { %s494_s27 = sshll.u32 %s637_s26, 4  ;;  %s496_s30 = sshll.u32 %s807_s3, 4  ;;  %s495_s27 = int_to_ptr.vmem [resolvable:$true] %s494_s27  ;;  %s497_s30 = int_to_ptr.hbm [resolvable:$true] %s496_s30 }
   0xd   :  { %v664_v1 = vshrl.u32 %v42_v0, 7  ;;  %v697_v27 = vand.u32 127, %v42_v0 }
   0xf   :  { %vm670_vm0 = vcmp.lt.s32.totalorder %v664_v1, %v48_v2  ;;  %v126_v30 = vmul.u32 4, %v697_v27 }
  0x10   :  { %v676_v5 = vsel %vm670_vm0, %v52_v4, 0.0  ;;  %v687_v13 = vsel %vm670_vm0, %v55_v9, 0.0  ;;  %v636_v4 = vmov 0.0  }
  0x11   :  { %v57_v6 = vand.u32 2147483647, %v676_v5  ;;  %v79_v15 = vmax.f32 %v676_v5, 0.0  ;;  %v80_v16 = vmul.f32 %v687_v13, %v676_v5  ;;  %vm120_vm2 = vcmp.gt.f32.partialorder %v687_v13, 0.0 }
  0x12   :  { %v121_v25 = vsel %vm120_vm2, 1, %v635_v24  ;;  %vm118_vm3 = vcmp.gt.f32.partialorder %v676_v5, 0.0 }
  0x13   :  { %v58_v7 = vsub.f32 0.0, %v57_v6  ;;  %v81_v20 = vsub.f32 %v79_v15, %v80_v16  ;;  %v122_v26 = vmul.u32 2, %v121_v25  ;;  %v119_v28 = vsel %vm118_vm3, 1, %v635_v24 }
  0x15   :  { %v59_v8 = vmul.f32 1.442695, %v58_v7  ;;  %v123_v29 = vadd.s32 %v122_v26, %v119_v28 }
  0x17   :  { %547 = vpow2.f32 %v59_v8  ;;  %v700_v31 = vadd.s32 %v126_v30, %v123_v29 }
  0x1d   :  { %v679_v10 = vpop.eup %547 }
  0x1e   :  { %v682_v11 = vadd.f32 1.0, %v679_v10  ;;  %v85_v12 = vmul.f32 -0.5, %v679_v10  ;;  %v88_v17 = vand.u32 2147483647, %v679_v10 }
  0x20   :  { %549 = vlog2.f32 %v682_v11  ;;  %v86_v14 = vadd.f32 1.0, %v85_v12  ;;  %vm89_vm1 = vcmp.lt.f32.partialorder %v88_v17, 0.0004427343 }
  0x21   :  { %551 = vrcp.f32 %v682_v11 }
  0x22   :  { %v87_v18 = vmul.f32 %v679_v10, %v86_v14 }
  0x26   :  { %v550_v19 = vpop.eup %549 }
  0x27   :  { %v84_v21 = vmul.f32 0.6931472, %v550_v19 }
  0x29   :  { %v90_v22 = vsel %vm89_vm1, %v87_v18, %v84_v21 }
  0x2a   :  { %v91_v23 = vadd.f32 %v90_v22, %v81_v20 }
  0x2c   :  { %128 = vmax.xlane.f32.xlu0 %v91_v23 }
  0x9f   :  { %v702_v32 = vpop.xlane.xlu0 %128 }
  0xa0   :  { %vm130_vm4 = vcmp.eq.f32.partialorder %v91_v23, %v702_v32 }
  0xa1   :  { %v131_v33 = vsel %vm130_vm4, %v700_v31, 512 }
  0xa2   :  { %v133_v34 = vshra.s32 %v131_v33, 16  ;;  %v132_v36 = vand.u32 65535, %v131_v33 }
  0xa4   :  { %v135_v35 = vcvt.s32.f32 %v133_v34  ;;  %v134_v38 = vcvt.s32.f32 %v132_v36 }
  0xa6   :  { %136 = vmin.xlane.f32.xlu0 %v135_v35 }
 0x119   :  { %v137_v37 = vpop.xlane.xlu0 %136 }
 0x11a   :  { %vm138_vm5 = vcmp.eq.f32.partialorder %v135_v35, %v137_v37  ;;  %v143_v40 = vcvt.f32.s32 %v137_v37 }
 0x11b   :  { %v139_v39 = vsel %vm138_vm5, %v134_v38, inf }
 0x11c   :  { %140 = vmin.xlane.f32.xlu1 %v139_v39  ;;  %v144_v42 = vshll.u32 %v143_v40, 16 }
 0x18f   :  { %v141_v41 = vpop.xlane.xlu1 %140 }
 0x190   :  { %v142_v43 = vcvt.f32.s32 %v141_v41 }
 0x192   :  { %v145_v44 = vadd.s32 %v144_v42, %v142_v43 }
 0x194   :  { %vm147_vm6 = vcmp.eq.s32.totalorder %v700_v31, %v145_v44  ;;  %v146_v55 = vand.u32 3, %v145_v44 }
 0x195   :  { %v148_v45 = vsel %vm147_vm6, -inf, %v91_v23 }
 0x196   :  { %164 = vmax.xlane.f32.xlu1 %v148_v45  ;;  %v150_v59 = vand.u32 1, %v146_v55  ;;  %v155_v60 = vand.u32 2, %v146_v55  ;;  %vm160_vm9 = vcmp.gt.s32.totalorder %v146_v55, 0 }
 0x197   :  { %v510_v6 = vsel %vm160_vm9, 1.0, %v636_v4 }
 0x198   :  { %vm151_vm11 = vcmp.gt.s32.totalorder %v150_v59, 0  ;;  %vm156_vm12 = vcmp.gt.s32.totalorder %v155_v60, 0 }
 0x199   :  { %v508_v9 = vsel %vm151_vm11, 1.0, %v636_v4  ;;  %v509_v12 = vsel %vm156_vm12, 1.0, %v636_v4 }
 0x209   :  { %v707_v46 = vpop.xlane.xlu1 %164 }
 0x20a   :  { %vm166_vm7 = vcmp.eq.f32.partialorder %v148_v45, %v707_v46 }
 0x20b   :  { %v167_v47 = vsel %vm166_vm7, %v700_v31, 512 }
 0x20c   :  { %v169_v48 = vshra.s32 %v167_v47, 16  ;;  %v168_v50 = vand.u32 65535, %v167_v47 }
 0x20e   :  { %v171_v49 = vcvt.s32.f32 %v169_v48  ;;  %v170_v52 = vcvt.s32.f32 %v168_v50 }
 0x210   :  { %172 = vmin.xlane.f32.xlu2 %v171_v49 }
 0x283   :  { %v173_v51 = vpop.xlane.xlu2 %172 }
 0x284   :  { %vm174_vm8 = vcmp.eq.f32.partialorder %v171_v49, %v173_v51  ;;  %v179_v54 = vcvt.f32.s32 %v173_v51 }
 0x285   :  { %v175_v53 = vsel %vm174_vm8, %v170_v52, inf }
 0x286   :  { %176 = vmin.xlane.f32.xlu2 %v175_v53  ;;  %v180_v57 = vshll.u32 %v179_v54, 16 }
 0x2f9   :  { %v177_v56 = vpop.xlane.xlu2 %176 }
 0x2fa   :  { %v178_v58 = vcvt.f32.s32 %v177_v56 }
 0x2fc   :  { %v181_v61 = vadd.s32 %v180_v57, %v178_v58 }
 0x2fe   :  { %v182_v62 = vand.u32 3, %v181_v61  ;;  %vm183_vm10 = vcmp.eq.s32.totalorder %v700_v31, %v181_v61 }
 0x2ff   :  { %v184_v63 = vsel %vm183_vm10, -inf, %v148_v45 }
 0x300   :  { %v186_v0 = vand.u32 1, %v182_v62  ;;  %v191_v2 = vand.u32 2, %v182_v62  ;;  %vm196_vm13 = vcmp.gt.s32.totalorder %v182_v62, 0  ;;  %200 = vmax.xlane.f32.xlu0 %v184_v63 }
 0x301   :  { %v513_v7 = vsel %vm196_vm13, 1.0, %v636_v4 }
 0x302   :  { %vm187_vm14 = vcmp.gt.s32.totalorder %v186_v0, 0  ;;  %vm192_vm15 = vcmp.gt.s32.totalorder %v191_v2, 0  ;;  %v199_v8 = vadd.f32 %v513_v7, %v510_v6 }
 0x303   :  { %v511_v14 = vsel %vm187_vm14, 1.0, %v636_v4  ;;  %v512_v15 = vsel %vm192_vm15, 1.0, %v636_v4 }
 0x304   :  { %v190_v16 = vadd.f32 %v511_v14, %v508_v9  ;;  %v195_v17 = vadd.f32 %v512_v15, %v509_v12 }
 0x373   :  { %v718_v18 = vpop.xlane.xlu0 %200 }
 0x374   :  { %vm202_vm1 = vcmp.eq.f32.partialorder %v184_v63, %v718_v18 }
 0x375   :  { %v203_v19 = vsel %vm202_vm1, %v700_v31, 512 }
 0x376   :  { %v205_v20 = vshra.s32 %v203_v19, 16  ;;  %v204_v22 = vand.u32 65535, %v203_v19 }
 0x378   :  { %v207_v21 = vcvt.s32.f32 %v205_v20  ;;  %v206_v24 = vcvt.s32.f32 %v204_v22 }
 0x37a   :  { %208 = vmin.xlane.f32.xlu1 %v207_v21 }
 0x3ed   :  { %v209_v23 = vpop.xlane.xlu1 %208 }
 0x3ee   :  { %vm210_vm2 = vcmp.eq.f32.partialorder %v207_v21, %v209_v23  ;;  %v215_v26 = vcvt.f32.s32 %v209_v23 }
 0x3ef   :  { %v211_v25 = vsel %vm210_vm2, %v206_v24, inf }
 0x3f0   :  { %212 = vmin.xlane.f32.xlu2 %v211_v25  ;;  %v216_v29 = vshll.u32 %v215_v26, 16 }
 0x463   :  { %v213_v28 = vpop.xlane.xlu2 %212 }
 0x464   :  { %v214_v30 = vcvt.f32.s32 %v213_v28 }
 0x466   :  { %v217_v33 = vadd.s32 %v216_v29, %v214_v30 }
 0x468   :  { %v218_v34 = vand.u32 3, %v217_v33  ;;  %vm219_vm3 = vcmp.eq.s32.totalorder %v700_v31, %v217_v33 }
 0x469   :  { %v220_v35 = vsel %vm219_vm3, -inf, %v184_v63 }
 0x46a   :  { %v222_v36 = vand.u32 1, %v218_v34  ;;  %v227_v37 = vand.u32 2, %v218_v34  ;;  %vm232_vm4 = vcmp.gt.s32.totalorder %v218_v34, 0  ;;  %236 = vmax.xlane.f32.xlu0 %v220_v35 }
 0x46b   :  { %v516_v38 = vsel %vm232_vm4, 1.0, %v636_v4 }
 0x46c   :  { %vm223_vm5 = vcmp.gt.s32.totalorder %v222_v36, 0  ;;  %vm228_vm6 = vcmp.gt.s32.totalorder %v227_v37, 0  ;;  %v235_v39 = vadd.f32 %v516_v38, %v199_v8 }
 0x46d   :  { %v514_v40 = vsel %vm223_vm5, 1.0, %v636_v4  ;;  %v515_v41 = vsel %vm228_vm6, 1.0, %v636_v4 }
 0x46e   :  { %v226_v42 = vadd.f32 %v514_v40, %v190_v16  ;;  %v231_v43 = vadd.f32 %v515_v41, %v195_v17 }
 0x4dd   :  { %v726_v44 = vpop.xlane.xlu0 %236 }
 0x4de   :  { %vm238_vm7 = vcmp.eq.f32.partialorder %v220_v35, %v726_v44 }
 0x4df   :  { %v239_v45 = vsel %vm238_vm7, %v700_v31, 512 }
 0x4e0   :  { %v241_v47 = vshra.s32 %v239_v45, 16  ;;  %v240_v49 = vand.u32 65535, %v239_v45 }
 0x4e2   :  { %v243_v48 = vcvt.s32.f32 %v241_v47  ;;  %v242_v51 = vcvt.s32.f32 %v240_v49 }
 0x4e4   :  { %244 = vmin.xlane.f32.xlu1 %v243_v48 }
 0x557   :  { %v245_v50 = vpop.xlane.xlu1 %244 }
 0x558   :  { %vm246_vm8 = vcmp.eq.f32.partialorder %v243_v48, %v245_v50  ;;  %v251_v53 = vcvt.f32.s32 %v245_v50 }
 0x559   :  { %v247_v52 = vsel %vm246_vm8, %v242_v51, inf }
 0x55a   :  { %248 = vmin.xlane.f32.xlu2 %v247_v52  ;;  %v252_v55 = vshll.u32 %v251_v53, 16 }
 0x5cd   :  { %v249_v54 = vpop.xlane.xlu2 %248 }
 0x5ce   :  { %v250_v56 = vcvt.f32.s32 %v249_v54 }
 0x5d0   :  { %v253_v57 = vadd.s32 %v252_v55, %v250_v56 }
 0x5d2   :  { %v254_v58 = vand.u32 3, %v253_v57  ;;  %vm255_vm9 = vcmp.eq.s32.totalorder %v700_v31, %v253_v57 }
 0x5d3   :  { %v256_v59 = vsel %vm255_vm9, -inf, %v220_v35 }
 0x5d4   :  { %v258_v60 = vand.u32 1, %v254_v58  ;;  %v263_v61 = vand.u32 2, %v254_v58  ;;  %vm268_vm10 = vcmp.gt.s32.totalorder %v254_v58, 0  ;;  %272 = vmax.xlane.f32.xlu0 %v256_v59 }
 0x5d5   :  { %v519_v62 = vsel %vm268_vm10, 1.0, %v636_v4 }
 0x5d6   :  { %vm259_vm11 = vcmp.gt.s32.totalorder %v258_v60, 0  ;;  %vm264_vm12 = vcmp.gt.s32.totalorder %v263_v61, 0  ;;  %v271_v63 = vadd.f32 %v519_v62, %v235_v39 }
 0x5d7   :  { %v517_v0 = vsel %vm259_vm11, 1.0, %v636_v4  ;;  %v518_v2 = vsel %vm264_vm12, 1.0, %v636_v4 }
 0x5d8   :  { %v262_v6 = vadd.f32 %v517_v0, %v226_v42  ;;  %v267_v7 = vadd.f32 %v518_v2, %v231_v43 }
 0x647   :  { %v734_v8 = vpop.xlane.xlu0 %272 }
 0x648   :  { %vm274_vm13 = vcmp.eq.f32.partialorder %v256_v59, %v734_v8 }
 0x649   :  { %v275_v9 = vsel %vm274_vm13, %v700_v31, 512 }
 0x64a   :  { %v277_v12 = vshra.s32 %v275_v9, 16  ;;  %v276_v15 = vand.u32 65535, %v275_v9 }
 0x64c   :  { %v279_v14 = vcvt.s32.f32 %v277_v12  ;;  %v278_v17 = vcvt.s32.f32 %v276_v15 }
 0x64e   :  { %280 = vmin.xlane.f32.xlu1 %v279_v14 }
 0x6c1   :  { %v281_v16 = vpop.xlane.xlu1 %280 }
 0x6c2   :  { %vm282_vm14 = vcmp.eq.f32.partialorder %v279_v14, %v281_v16  ;;  %v287_v20 = vcvt.f32.s32 %v281_v16 }
 0x6c3   :  { %v283_v19 = vsel %vm282_vm14, %v278_v17, inf }
 0x6c4   :  { %284 = vmin.xlane.f32.xlu2 %v283_v19  ;;  %v288_v22 = vshll.u32 %v287_v20, 16 }
 0x737   :  { %v285_v21 = vpop.xlane.xlu2 %284 }
 0x738   :  { %v286_v23 = vcvt.f32.s32 %v285_v21 }
 0x73a   :  { %v289_v24 = vadd.s32 %v288_v22, %v286_v23 }
 0x73c   :  { %v290_v25 = vand.u32 3, %v289_v24  ;;  %vm291_vm15 = vcmp.eq.s32.totalorder %v700_v31, %v289_v24 }
 0x73d   :  { %v292_v26 = vsel %vm291_vm15, -inf, %v256_v59 }
 0x73e   :  { %v294_v28 = vand.u32 1, %v290_v25  ;;  %v299_v29 = vand.u32 2, %v290_v25  ;;  %vm304_vm1 = vcmp.gt.s32.totalorder %v290_v25, 0  ;;  %308 = vmax.xlane.f32.xlu0 %v292_v26 }
 0x73f   :  { %v522_v30 = vsel %vm304_vm1, 1.0, %v636_v4  ;;  %vm67_vm1 = vweird.f32 %v682_v11 }
 0x740   :  { %vm295_vm2 = vcmp.gt.s32.totalorder %v294_v28, 0  ;;  %vm300_vm3 = vcmp.gt.s32.totalorder %v299_v29, 0  ;;  %v307_v33 = vadd.f32 %v522_v30, %v271_v63 }
 0x741   :  { %v520_v34 = vsel %vm295_vm2, 1.0, %v636_v4  ;;  %v521_v35 = vsel %vm300_vm3, 1.0, %v636_v4 }
 0x742   :  { %v298_v36 = vadd.f32 %v520_v34, %v262_v6  ;;  %v303_v37 = vadd.f32 %v521_v35, %v267_v7  ;;  %v552_v34 = vpop.eup %551 }
 0x743   :  { %v63_v35 = vmul.f32 %v552_v34, %v682_v11  ;;  %vm68_vm2 = vweird.f32 %v552_v34 }
 0x744   :  { %vm69_vm3 = vmor %vm67_vm1, %vm68_vm2  ;;  %vm472_vm1 = vcmp.eq.s32.totalorder %v697_v27, 3  ;;  %vm471_vm2 = vcmp.eq.s32.totalorder %v697_v27, 2 }
 0x7b1   :  { %v742_v38 = vpop.xlane.xlu0 %308 }
 0x7b2   :  { %vm310_vm4 = vcmp.eq.f32.partialorder %v292_v26, %v742_v38 }
 0x7b3   :  { %v311_v39 = vsel %vm310_vm4, %v700_v31, 512 }
 0x7b4   :  { %v313_v40 = vshra.s32 %v311_v39, 16  ;;  %v312_v42 = vand.u32 65535, %v311_v39  ;;  %v73_v39 = vand.u32 2147483648, %v682_v11 }
 0x7b6   :  { %v315_v41 = vcvt.s32.f32 %v313_v40  ;;  %v314_v45 = vcvt.s32.f32 %v312_v42  ;;  %v74_v42 = vor.u32 1.1754944e-38, %v73_v39 }
 0x7b8   :  { %316 = vmin.xlane.f32.xlu1 %v315_v41 }
 0x82b   :  { %v317_v43 = vpop.xlane.xlu1 %316 }
 0x82c   :  { %vm318_vm5 = vcmp.eq.f32.partialorder %v315_v41, %v317_v43  ;;  %v323_v48 = vcvt.f32.s32 %v317_v43  ;;  %v71_v41 = vand.u32 2147483647, %v682_v11 }
 0x82d   :  { %v319_v47 = vsel %vm318_vm5, %v314_v45, inf  ;;  %vm76_vm5 = vcmp.ge.f32.partialorder %v676_v5, 0.0  ;;  %v185_v5 = vadd.f32 %v707_v46, %v702_v32 }
 0x82e   :  { %320 = vmin.xlane.f32.xlu2 %v319_v47  ;;  %v324_v50 = vshll.u32 %v323_v48, 16  ;;  %vm72_vm4 = vcmp.eq.f32.partialorder %v71_v41, 8.507059e+37 }
 0x8a1   :  { %v321_v49 = vpop.xlane.xlu2 %320 }
 0x8a2   :  { %v322_v51 = vcvt.f32.s32 %v321_v49 }
 0x8a4   :  { %v325_v52 = vadd.s32 %v324_v50, %v322_v51 }
 0x8a6   :  { %v326_v53 = vand.u32 3, %v325_v52  ;;  %vm327_vm6 = vcmp.eq.s32.totalorder %v700_v31, %v325_v52 }
 0x8a7   :  { %v328_v54 = vsel %vm327_vm6, -inf, %v292_v26 }
 0x8a8   :  { %v330_v55 = vand.u32 1, %v326_v53  ;;  %v335_v56 = vand.u32 2, %v326_v53  ;;  %vm340_vm7 = vcmp.gt.s32.totalorder %v326_v53, 0  ;;  %344 = vmax.xlane.f32.xlu0 %v328_v54 }
 0x8a9   :  { %v525_v57 = vsel %vm340_vm7, 1.0, %v636_v4 }
 0x8aa   :  { %vm331_vm8 = vcmp.gt.s32.totalorder %v330_v55, 0  ;;  %vm336_vm9 = vcmp.gt.s32.totalorder %v335_v56, 0  ;;  %v343_v58 = vadd.f32 %v525_v57, %v307_v33  ;;  %v221_v57 = vadd.f32 %v718_v18, %v185_v5 }
 0x8ab   :  { %v523_v59 = vsel %vm331_vm8, 1.0, %v636_v4  ;;  %v524_v60 = vsel %vm336_vm9, 1.0, %v636_v4 }
 0x8ac   :  { %v334_v61 = vadd.f32 %v523_v59, %v298_v36  ;;  %v339_v62 = vadd.f32 %v524_v60, %v303_v37  ;;  %v64_v36 = vsub.f32 1.0, %v63_v35 }
 0x8ae   :  { %v65_v37 = vmul.f32 %v552_v34, %v64_v36 }
 0x8b0   :  { %v66_v40 = vadd.f32 %v552_v34, %v65_v37 }
 0x8b2   :  { %v70_v43 = vsel %vm69_vm3, %v552_v34, %v66_v40  ;;  %vm470_vm3 = vcmp.eq.s32.totalorder %v697_v27, 1 }
 0x8b3   :  { %v75_v45 = vsel %vm72_vm4, %v74_v42, %v70_v43  ;;  %vm469_vm4 = vcmp.eq.s32.totalorder %v697_v27, 0 }
 0x8b4   :  { %v77_v47 = vmul.f32 %v679_v10, %v75_v45 }
 0x8b6   :  { %v78_v48 = vsel %vm76_vm5, %v75_v45, %v77_v47  ;;  %vm484_vm5 = vcmp.eq.s32.totalorder %v664_v1, 0 }
 0x8b7   :  { %v96_v49 = vadd.f32 %v78_v48, %v687_v13  ;;  %v92_v11 = vmul.f32 %v78_v48, %v687_v13 }
 0x91b   :  { %v750_v63 = vpop.xlane.xlu0 %344 }
 0x91c   :  { %vm346_vm10 = vcmp.eq.f32.partialorder %v328_v54, %v750_v63 }
 0x91d   :  { %v347_v0 = vsel %vm346_vm10, %v700_v31, 512 }
 0x91e   :  { %v349_v2 = vshra.s32 %v347_v0, 16  ;;  %v348_v7 = vand.u32 65535, %v347_v0 }
 0x920   :  { %v351_v6 = vcvt.s32.f32 %v349_v2  ;;  %v350_v12 = vcvt.s32.f32 %v348_v7 }
 0x922   :  { %352 = vmin.xlane.f32.xlu1 %v351_v6 }
 0x995   :  { %v353_v9 = vpop.xlane.xlu1 %352 }
 0x996   :  { %vm354_vm11 = vcmp.eq.f32.partialorder %v351_v6, %v353_v9  ;;  %v359_v15 = vcvt.f32.s32 %v353_v9 }
 0x997   :  { %v355_v14 = vsel %vm354_vm11, %v350_v12, inf }
 0x998   :  { %356 = vmin.xlane.f32.xlu2 %v355_v14  ;;  %v360_v17 = vshll.u32 %v359_v15, 16 }
 0x9a0   :  { %97 = vadd.xlane.f32.xlu2 %v96_v49 }
 0xa0b   :  { %v357_v16 = vpop.xlane.xlu2 %356 }
 0xa0c   :  { %v358_v19 = vcvt.f32.s32 %v357_v16 }
 0xa0e   :  { %v361_v20 = vadd.s32 %v360_v17, %v358_v19 }
 0xa10   :  { %v362_v21 = vand.u32 3, %v361_v20  ;;  %vm363_vm12 = vcmp.eq.s32.totalorder %v700_v31, %v361_v20 }
 0xa11   :  { %v364_v22 = vsel %vm363_vm12, -inf, %v328_v54  ;;  %vm414_vm12 = vcmask 7168  }
 0xa12   :  { %380 = vmax.xlane.f32.xlu0 %v364_v22  ;;  %vm376_vm13 = vcmp.gt.s32.totalorder %v362_v21, 0  ;;  %v366_v23 = vand.u32 1, %v362_v21  ;;  %v371_v24 = vand.u32 2, %v362_v21 }
 0xa13   :  { %v528_v25 = vsel %vm376_vm13, 1.0, %v636_v4  ;;  %v98_v54 = vpop.xlane.xlu2 %97 }
 0xa14   :  { %v756_v26 = vadd.f32 %v528_v25, %v343_v58  ;;  %vm367_vm14 = vcmp.gt.s32.totalorder %v366_v23, 0  ;;  %vm372_vm15 = vcmp.gt.s32.totalorder %v371_v24, 0  ;;  %v100_v55 = vadd.f32 1.0, %v98_v54 }
 0xa15   :  { %v526_v28 = vsel %vm367_vm14, 1.0, %v636_v4  ;;  %v527_v29 = vsel %vm372_vm15, 1.0, %v636_v4  ;;  %v257_v58 = vadd.f32 %v726_v44, %v221_v57  ;;  %vm473_vm15 = vcmp.eq.s32.totalorder %v697_v27, 4 }
 0xa16   :  { %v760_v30 = vadd.f32 %v526_v28, %v334_v61  ;;  %v762_v33 = vadd.f32 %v527_v29, %v339_v62  ;;  %553 = vrcp.f32 %v100_v55  ;;  %vm106_vm8 = vweird.f32 %v100_v55 }
 0xa17   :  { %v112_v6 = vand.u32 2147483648, %v100_v55  ;;  %v110_v44 = vand.u32 2147483647, %v100_v55 }
 0xa19   :  { %vm111_vm11 = vcmp.eq.f32.partialorder %v110_v44, 8.507059e+37 }
 0xa1c   :  { %v554_v10 = vpop.eup %553 }
 0xa1d   :  { %v102_v56 = vmul.f32 %v554_v10, %v100_v55  ;;  %vm107_vm9 = vweird.f32 %v554_v10 }
 0xa1e   :  { %vm108_vm10 = vmor %vm106_vm8, %vm107_vm9 }
 0xa1f   :  { %v103_v59 = vsub.f32 1.0, %v102_v56 }
 0xa21   :  { %v104_v13 = vmul.f32 %v554_v10, %v103_v59 }
 0xa23   :  { %v105_v18 = vadd.f32 %v554_v10, %v104_v13 }
 0xa25   :  { %v109_v9 = vsel %vm108_vm10, %v554_v10, %v105_v18 }
 0xa85   :  { %v381_v50 = vpop.xlane.xlu0 %380 }
 0xa86   :  { %vm382_vm6 = vcmp.eq.f32.partialorder %v364_v22, %v381_v50 }
 0xa87   :  { %v383_v51 = vsel %vm382_vm6, %v700_v31, 512  ;;  %v293_v31 = vadd.f32 %v734_v8, %v257_v58  ;;  %v507_v8 = vsel %vm670_vm0, 1.0, %v636_v4 }
 0xa88   :  { %v385_v52 = vshra.s32 %v383_v51, 16  ;;  %v384_v60 = vand.u32 65535, %v383_v51 }
 0xa89   :  { %v329_v61 = vadd.f32 %v742_v38, %v293_v31  ;;  %v113_v38 = vor.u32 1.1754944e-38, %v112_v6 }
 0xa8a   :  { %v387_v53 = vcvt.s32.f32 %v385_v52  ;;  %v386_v2 = vcvt.s32.f32 %v384_v60 }
 0xa8b   :  { %v365_v62 = vadd.f32 %v750_v63, %v329_v61  ;;  %v114_v14 = vsel %vm111_vm11, %v113_v38, %v109_v9 }
 0xa8c   :  { %388 = vmin.xlane.f32.xlu1 %v387_v53 }
 0xa8d   :  { %v399_v32 = vadd.f32 %v381_v50, %v365_v62 }
 0xa8f   :  { %v425_v7 = vmul.f32 %v507_v8, %v399_v32 }
 0xa91   :  { %v426_v15 = vsel %vm414_vm12, %v425_v7, 0.0 }
 0xa94   :  { %93 = vadd.xlane.f32.xlu1 %v92_v11 }
 0xaff   :  { %v389_v0 = vpop.xlane.xlu1 %388 }
 0xb00   :  { %vm390_vm7 = vcmp.eq.f32.partialorder %v387_v53, %v389_v0  ;;  %v395_v3 = vcvt.f32.s32 %v389_v0 }
 0xb01   :  { %v391_v46 = vsel %vm390_vm7, %v386_v2, inf }
 0xb02   :  { %392 = vmin.xlane.f32.xlu0 %v391_v46  ;;  %v396_v23 = vshll.u32 %v395_v3, 16 }
 0xb07   :  { %v94_v63 = vpop.xlane.xlu1 %93 }
 0xb08   :  { %v95_v12 = vmul.f32 2.0, %v94_v63 }
 0xb0a   :  { %v99_v16 = vadd.f32 1.0, %v95_v12  ;;  %427 = vadd.xlane.f32.xlu0 %v426_v15 }
 0xb0c   :  { %v115_v17 = vmul.f32 %v114_v14, %v99_v16 }
 0xb0e   :  { %v116_v19 = vsub.f32 1.0, %v115_v17 }
 0xb10   :  { %v117_v20 = vmul.f32 %v507_v8, %v116_v19 }
 0xb12   :  { %v415_v21 = vsel %vm414_vm12, %v117_v20, 0.0 }
 0xb13   :  { %416 = vadd.xlane.f32.xlu2 %v415_v21 }
 0xb75   :  { %v393_v22 = vpop.xlane.xlu0 %392 }
 0xb76   :  { %v394_v24 = vcvt.f32.s32 %v393_v22 }
 0xb78   :  { %v397_v25 = vadd.s32 %v396_v23, %v394_v24 }
 0xb7a   :  { %v398_v28 = vand.u32 3, %v397_v25 }
 0xb7c   :  { %vm410_vm0 = vcmp.gt.s32.totalorder %v398_v28, 0  ;;  %v400_v29 = vand.u32 1, %v398_v28  ;;  %v405_v34 = vand.u32 2, %v398_v28 }
 0xb7d   :  { %v428_v35 = vpop.xlane.xlu0 %427  ;;  %v531_v36 = vsel %vm410_vm0, 1.0, %v636_v4 }
 0xb7e   :  { %v429_v37 = vrot.slane %v428_v35, 4  ;;  %v413_v39 = vadd.f32 %v531_v36, %v756_v26  ;;  %vm401_vm13 = vcmp.gt.s32.totalorder %v400_v29, 0  ;;  %vm406_vm14 = vcmp.gt.s32.totalorder %v405_v34, 0 }
 0xb7f   :  { %v529_v40 = vsel %vm401_vm13, 1.0, %v636_v4  ;;  %v530_v41 = vsel %vm406_vm14, 1.0, %v636_v4 }
 0xb80   :  { %v458_v42 = vmul.f32 %v507_v8, %v413_v39  ;;  %v404_v43 = vadd.f32 %v529_v40, %v760_v30  ;;  %v409_v45 = vadd.f32 %v530_v41, %v762_v33  ;;  %v430_v47 = vadd.f32 %v429_v37, %v428_v35 }
 0xb82   :  { %v459_v48 = vsel %vm414_vm12, %v458_v42, 0.0  ;;  %v436_v49 = vmul.f32 %v507_v8, %v404_v43  ;;  %v447_v50 = vmul.f32 %v507_v8, %v409_v45  ;;  %v431_v52 = vrot.slane %v430_v47, 2 }
 0xb83   :  { %460 = vadd.xlane.f32.xlu0 %v459_v48 }
 0xb84   :  { %v437_v51 = vsel %vm414_vm12, %v436_v49, 0.0  ;;  %v448_v26 = vsel %vm414_vm12, %v447_v50, 0.0  ;;  %v432_v54 = vadd.f32 %v431_v52, %v430_v47 }
 0xb85   :  { %438 = vadd.xlane.f32.xlu1 %v437_v51  ;;  %449 = vadd.xlane.f32.xlu2 %v448_v26 }
 0xb86   :  { %v417_v53 = vpop.xlane.xlu2 %416  ;;  %v433_v33 = vrot.slane %v432_v54, 1 }
 0xb87   :  { %v418_v4 = vrot.slane %v417_v53, 4 }
 0xb88   :  { %v434_v56 = vadd.f32 %v433_v33, %v432_v54 }
 0xb89   :  { %v419_v11 = vadd.f32 %v418_v4, %v417_v53 }
 0xb8b   :  { %v420_v30 = vrot.slane %v419_v11, 2 }
 0xb8d   :  { %v421_v55 = vadd.f32 %v420_v30, %v419_v11 }
 0xb8f   :  { %v422_v10 = vrot.slane %v421_v55, 1 }
 0xb91   :  { %v423_v5 = vadd.f32 %v422_v10, %v421_v55 }
 0xb93   :  { %532 = vpush %v423_v5 }
 0xb94   :  { %534 = vpush %v434_v56 }
 0xbc4   :  { %s533_s0 = spop %532 }
 0xbc5   :  { %s535_s2 = spop %534  ;;  %v482_v3 = vstv %s533_s0 }
 0xbc6   :  { %v480_v20 = vstv %s535_s2 }
 0xbf6   :  { %v461_v57 = vpop.xlane.xlu0 %460 }
 0xbf7   :  { %v462_v58 = vrot.slane %v461_v57, 4 }
 0xbf8   :  { %v450_v59 = vpop.xlane.xlu2 %449  ;;  %v439_v31 = vpop.xlane.xlu1 %438 }
 0xbf9   :  { %v463_v60 = vadd.f32 %v462_v58, %v461_v57  ;;  %v451_v61 = vrot.slane %v450_v59, 4  ;;  %v440_v13 = vrot.slane %v439_v31, 4 }
 0xbfb   :  { %v464_v62 = vrot.slane %v463_v60, 2  ;;  %v452_v0 = vadd.f32 %v451_v61, %v450_v59  ;;  %v441_v2 = vadd.f32 %v440_v13, %v439_v31 }
 0xbfd   :  { %v465_v32 = vadd.f32 %v464_v62, %v463_v60  ;;  %v453_v46 = vrot.slane %v452_v0, 2  ;;  %v442_v6 = vrot.slane %v441_v2, 2 }
 0xbff   :  { %v454_v18 = vadd.f32 %v453_v46, %v452_v0  ;;  %v443_v44 = vadd.f32 %v442_v6, %v441_v2  ;;  %v466_v7 = vrot.slane %v465_v32, 1 }
 0xc01   :  { %v444_v8 = vrot.slane %v443_v44, 1  ;;  %v455_v38 = vrot.slane %v454_v18, 1  ;;  %v467_v12 = vadd.f32 %v466_v7, %v465_v32 }
 0xc03   :  { %v445_v9 = vadd.f32 %v444_v8, %v443_v44  ;;  %v456_v63 = vadd.f32 %v455_v38, %v454_v18 }
 0xc05   :  { %536 = vpush %v445_v9 }
 0xc06   :  { %538 = vpush %v456_v63 }
 0xc07   :  { %540 = vpush %v467_v12 }
 0xc36   :  { %s537_s23 = spop %536 }
 0xc37   :  { %s539_s24 = spop %538  ;;  %v478_v17 = vstv %s537_s23 }
 0xc38   :  { %v476_v14 = vstv %s539_s24  ;;  %s541_s25 = spop %540 }
 0xc39   :  { %v474_v15 = vstv %s541_s25 }
 0xc3a   :  { %v475_v16 = vsel %vm473_vm15, %v474_v15, 0.0 }
 0xc3b   :  { %v477_v19 = vsel %vm472_vm1, %v476_v14, %v475_v16 }
 0xc3c   :  { %v479_v21 = vsel %vm471_vm2, %v478_v17, %v477_v19 }
 0xc3d   :  { %v481_v22 = vsel %vm470_vm3, %v480_v20, %v479_v21 }
 0xc3e   :  { %v483_v23 = vsel %vm469_vm4, %v482_v3, %v481_v22 }
 0xc3f   :  { %v487_v24 = vsel %vm484_vm5, %v483_v23, 0.0 }
 0xc40   :  { %488 = vst [vmem:[#allocation9] sm:$0xff] %v487_v24 }
 0xc41   :  { %499 = dma.vmem_to_hbm [thread:$0]  %s495_s27, 128, %s497_s30, [#allocation6]  }
 0xc42   :  { %631 = dma.done.wait [#allocation6], 128  }
 0xc43   :  { %632 = vsyncadd [#allocation6], 4294967168 }
 0xc44   :  { %504 = vsyncpa [#allocation5], 1 }
 0xc45   :  { %505 = vsyncpa [#allocation8], 1 }
 0xc46   :  { %506 = vsyncpa [#allocation6], 1 }

</bundles_post_ra>
